<compile_context>
chip_gen: v7x
topology: tpu7x:2x2x1
jax: 0.10.0
libtpu: 0.0.40
codegen_flags: <defaults>
</compile_context>

<pallas_src>
import jax
import jax.numpy as jnp
from jax.experimental import pallas as pl
from jax.experimental.pallas import tpu as pltpu

FEATURE_DIM = 96          # 64 + 16 + 16
H_DIM = 64
EVENT_HIDDEN = 48         # 2 * event_hidden_size == FEATURE_DIM  =>  event_hidden_size = 48
N_CLUSTERS = 4
BN_EPS = 1e-5

PACK1 = 128               # fused lane width: [classifier h (64) | domain d (48) | zero pad (16)]
PACK_OUT = 8              # packed output: [pre (2) | event (4) | pad (2)]
MAX_TILE = 8192           # max batch-tile rows (VMEM use ~20 MiB at 8192, under the 48 MiB limit)
MIN_SPLIT = 256           # split into >=2 tiles (v7x megacore) once b_pad >= 2*MIN_SPLIT
VMEM_LIMIT_BYTES = 48 * 1024 * 1024
NEG_BIG = -1e30


def _round_up(x, n):
    return (x + n - 1) // n * n


def _nnq_kernel(m_ref, w1_ref, b1_ref, w2_ref, b2_ref, w3_ref, b3_ref, out_ref):
    m = m_ref[...].astype(jnp.bfloat16)                                 # (TB, 96), cast in-kernel

    # Layer 1 (fused, 128 lanes): lanes 0:64 classifier fc1 (BN1 folded), 64:112 domain d_fc1,
    # 112:128 zero pad.
    z1 = jnp.dot(m, w1_ref[...], preferred_element_type=jnp.float32) + b1_ref[...]
    lane = jax.lax.broadcasted_iota(jnp.int32, (1, PACK1), 1)
    cls_mask = lane < H_DIM
    # Classifier ReLU on lanes 0:64; domain d_relu1 = nn.LeakyReLU(True) -> slope 1.0 -> identity.
    a1 = jnp.where(cls_mask, jnp.maximum(z1, 0.0), z1).astype(jnp.bfloat16)

    # Layer 2 (block-diag 128x128): lanes 0:64 classifier fc2 (BN2 folded) + ReLU;
    # lanes 64:112 identity carry of the domain features (Dropout in eval = identity).
    z2 = jnp.dot(a1, w2_ref[...], preferred_element_type=jnp.float32) + b2_ref[...]
    a2 = jnp.where(cls_mask, jnp.maximum(z2, 0.0), z2).astype(jnp.bfloat16)

    # Layer 3 (block-diag heads 128x8): cols 0:2 classifier head, 2:6 domain head,
    # 6:8 pad lanes biased to -1e30 so they vanish in the segmented softmax.
    logits = jnp.dot(a2, w3_ref[...], preferred_element_type=jnp.float32) + b3_ref[...]

    # Segmented row softmax over the packed 8-lane slab: segment0 = lanes [0:2], segment1 = [2:6].
    lane8 = jax.lax.broadcasted_iota(jnp.int32, (1, PACK_OUT), 1)
    seg0 = lane8 < 2
    mx0 = jnp.max(jnp.where(seg0, logits, NEG_BIG), axis=-1, keepdims=True)
    mx1 = jnp.max(jnp.where(seg0, NEG_BIG, logits), axis=-1, keepdims=True)
    mseg = jnp.where(seg0, mx0, mx1)
    e = jnp.exp(logits - mseg)                                          # pad lanes -> 0
    s0 = jnp.sum(jnp.where(seg0, e, 0.0), axis=-1, keepdims=True)
    s1 = jnp.sum(jnp.where(seg0, 0.0, e), axis=-1, keepdims=True)
    sseg = jnp.where(seg0, s0, s1)
    out_ref[...] = e * pl.reciprocal(sseg, approx=True)                 # single full store


def _fold_and_pack(params):
    """Fold eval-mode BatchNorm into the Linears and build the fused / padded weights."""
    (w1, b1, g1, be1, rm1, rv1,
     w2, b2, g2, be2, rm2, rv2,
     w3, b3,
     dw1, db1, dw2, db2) = params

    s1 = g1 * jax.lax.rsqrt(rv1 + BN_EPS)
    w1f = w1 * s1                                   # per-output-column scale
    b1f = (b1 - rm1) * s1 + be1
    s2 = g2 * jax.lax.rsqrt(rv2 + BN_EPS)
    w2f = w2 * s2
    b2f = (b2 - rm2) * s2 + be2

    # Layer 1: [classifier fc1+BN1 | domain d_fc1 | zero pad] -> (96, 128)
    pad1 = PACK1 - H_DIM - EVENT_HIDDEN
    w1p = jnp.concatenate(
        [w1f, dw1, jnp.zeros((FEATURE_DIM, pad1), jnp.float32)], axis=1).astype(jnp.bfloat16)
    b1p = jnp.concatenate([b1f, db1, jnp.zeros((1, pad1), jnp.float32)], axis=1)

    # Layer 2: block-diag [[fc2+BN2, 0, 0], [0, I_48, 0], [0, 0, 0]] -> (128, 128)
    w2p = jnp.zeros((PACK1, PACK1), jnp.float32)
    w2p = w2p.at[:H_DIM, :H_DIM].set(w2f)
    w2p = w2p.at[H_DIM:H_DIM + EVENT_HIDDEN, H_DIM:H_DIM + EVENT_HIDDEN].set(
        jnp.eye(EVENT_HIDDEN, dtype=jnp.float32))
    w2p = w2p.astype(jnp.bfloat16)
    b2p = jnp.zeros((1, PACK1), jnp.float32).at[:, :H_DIM].set(b2f)

    # Layer 3: block-diag heads -> (128, 8); pad output lanes biased to -1e30.
    w3p = jnp.zeros((PACK1, PACK_OUT), jnp.float32)
    w3p = w3p.at[:H_DIM, 0:2].set(w3)
    w3p = w3p.at[H_DIM:H_DIM + EVENT_HIDDEN, 2:2 + N_CLUSTERS].set(dw2)
    w3p = w3p.astype(jnp.bfloat16)
    b3p = jnp.full((1, PACK_OUT), NEG_BIG, jnp.float32)
    b3p = b3p.at[:, 0:2].set(b3)
    b3p = b3p.at[:, 2:2 + N_CLUSTERS].set(db2)

    return w1p, b1p, w2p, b2p, w3p, b3p


def _choose_tile(b_pad):
    """Pick batch-tile rows: big tiles (amortize per-step overhead), >=2 tiles for large
    batches (v7x megacore), re-balanced so the masked final block wastes little work."""
    tb = min(MAX_TILE, b_pad)
    if b_pad >= 2 * MIN_SPLIT and pl.cdiv(b_pad, tb) < 2:
        tb = pl.cdiv(b_pad, 2)
    grid = pl.cdiv(b_pad, tb)
    tb = _round_up(pl.cdiv(b_pad, grid), 8)         # even out tiles; still covers b_pad
    grid = pl.cdiv(b_pad, tb)
    return tb, grid


@jax.jit
def nnq_forward(m, params):
    """m: (B, 96) float32.  Returns (pre: (B, 2), event_pre: (B, n_clusters))."""
    B = m.shape[0]
    b_pad = _round_up(B, 8)                         # minimal sublane pad only (no dtype prepass)
    if b_pad != B:
        m = jnp.pad(m, ((0, b_pad - B), (0, 0)))
    tb, grid = _choose_tile(b_pad)

    w1p, b1p, w2p, b2p, w3p, b3p = _fold_and_pack(params)

    const = lambda i: (0, 0)                        # weights fetched once, resident in VMEM
    packed = pl.pallas_call(
        _nnq_kernel,
        out_shape=jax.ShapeDtypeStruct((b_pad, PACK_OUT), jnp.float32),
        grid=(grid,),
        in_specs=[
            pl.BlockSpec((tb, FEATURE_DIM), lambda i: (i, 0)),   # m: f32, tiled over batch
            pl.BlockSpec((FEATURE_DIM, PACK1), const),
            pl.BlockSpec((1, PACK1), const),
            pl.BlockSpec((PACK1, PACK1), const),
            pl.BlockSpec((1, PACK1), const),
            pl.BlockSpec((PACK1, PACK_OUT), const),
            pl.BlockSpec((1, PACK_OUT), const),
        ],
        out_specs=pl.BlockSpec((tb, PACK_OUT), lambda i: (i, 0)),
        compiler_params=pltpu.CompilerParams(
            dimension_semantics=("parallel",),
            vmem_limit_bytes=VMEM_LIMIT_BYTES),
    )(m, w1p, b1p, w2p, b2p, w3p, b3p)

    pre = packed[:B, 0:2]
    event_pre = packed[:B, 2:2 + N_CLUSTERS]
    return pre, event_pre


def init_params(key):
    ks = jax.random.split(key, 7)

    def lin(k, din, dout):
        k1, k2 = jax.random.split(k)
        w = jax.random.normal(k1, (din, dout), jnp.float32) * 0.05   # stored (in, out)
        b = jax.random.normal(k2, (1, dout), jnp.float32) * 0.05
        return w, b

    def bn(k, dim):
        k1, k2 = jax.random.split(k)
        gamma = jnp.ones((1, dim), jnp.float32)
        beta = jnp.zeros((1, dim), jnp.float32)
        run_mean = jax.random.normal(k1, (1, dim), jnp.float32) * 0.1
        run_var = jnp.abs(jax.random.normal(k2, (1, dim), jnp.float32)) * 0.1 + 1.0
        return gamma, beta, run_mean, run_var

    w1, b1 = lin(ks[0], FEATURE_DIM, H_DIM)
    w2, b2 = lin(ks[1], H_DIM, H_DIM)
    w3, b3 = lin(ks[2], H_DIM, 2)
    dw1, db1 = lin(ks[3], FEATURE_DIM, EVENT_HIDDEN)
    dw2, db2 = lin(ks[4], EVENT_HIDDEN, N_CLUSTERS)
    g1, be1, rm1, rv1 = bn(ks[5], H_DIM)
    g2, be2, rm2, rv2 = bn(ks[6], H_DIM)

    return (w1, b1, g1, be1, rm1, rv1,
            w2, b2, g2, be2, rm2, rv2,
            w3, b3,
            dw1, db1, dw2, db2)


if __name__ == "__main__":
    key = jax.random.PRNGKey(0)
    k_m, k_p = jax.random.split(key)

    B = 8
    # TODO(synk): MultiDetModule / SemGraphLearner / MRF_layer are not defined in the reference
    # source; the fused multimodal feature m = MultiDetModule(text, image) of shape (B, 96) is
    # taken directly as the kernel input and opt['flag_mrf'] is treated as False.
    m = jax.random.normal(k_m, (B, FEATURE_DIM), jnp.float32)
    params = init_params(k_p)

    pre, event_pre = nnq_forward(m, params)
    jax.block_until_ready((pre, event_pre))

    assert pre.shape == (B, 2) and event_pre.shape == (B, N_CLUSTERS)
    assert bool(jnp.all(jnp.isfinite(pre))) and bool(jnp.all(jnp.isfinite(event_pre)))
    assert bool(jnp.allclose(jnp.sum(pre, axis=-1), 1.0, atol=1e-2))
    assert bool(jnp.allclose(jnp.sum(event_pre, axis=-1), 1.0, atol=1e-2))
    print("KERNEL_OK")
</pallas_src>

<mosaic_0001>
module attributes {stable_mosaic.version = 11 : i64} {
  func.func @_nnq_kernel(%arg0: i32, %arg1: memref<8x96xf32, #tpu.memory_space<vmem>>, %arg2: memref<96x128xbf16, #tpu.memory_space<vmem>>, %arg3: memref<1x128xf32, #tpu.memory_space<vmem>>, %arg4: memref<128x128xbf16, #tpu.memory_space<vmem>>, %arg5: memref<1x128xf32, #tpu.memory_space<vmem>>, %arg6: memref<128x8xbf16, #tpu.memory_space<vmem>>, %arg7: memref<1x8xf32, #tpu.memory_space<vmem>>, %arg8: memref<8x8xf32, #tpu.memory_space<vmem>>) attributes {dimension_semantics = [#tpu.dimension_semantics<parallel>], iteration_bounds = array<i64: 1>, scalar_prefetch = 0 : i64, scratch_operands = 0 : i64, tpu.core_type = #tpu.core_type<tc>, window_params = [{transform_indices = @transform_0, window_bounds = array<i64: 8, 96>}, {pipeline_mode = #tpu.pipeline_mode<synchronous>, transform_indices = @transform_1, window_bounds = array<i64: 96, 128>}, {pipeline_mode = #tpu.pipeline_mode<synchronous>, transform_indices = @transform_2, window_bounds = array<i64: 1, 128>}, {pipeline_mode = #tpu.pipeline_mode<synchronous>, transform_indices = @transform_3, window_bounds = array<i64: 128, 128>}, {pipeline_mode = #tpu.pipeline_mode<synchronous>, transform_indices = @transform_4, window_bounds = array<i64: 1, 128>}, {pipeline_mode = #tpu.pipeline_mode<synchronous>, transform_indices = @transform_5, window_bounds = array<i64: 128, 8>}, {pipeline_mode = #tpu.pipeline_mode<synchronous>, transform_indices = @transform_6, window_bounds = array<i64: 1, 8>}, {transform_indices = @transform_7, window_bounds = array<i64: 8, 8>}]} {
    %c0 = arith.constant 0 : index
    %c0_0 = arith.constant 0 : index
    %0 = vector.load %arg1[%c0, %c0_0] : memref<8x96xf32, #tpu.memory_space<vmem>>, vector<8x96xf32>
    %1 = arith.truncf %0 : vector<8x96xf32> to vector<8x96xbf16>
    %c0_1 = arith.constant 0 : index
    %c0_2 = arith.constant 0 : index
    %2 = vector.load %arg2[%c0_1, %c0_2] : memref<96x128xbf16, #tpu.memory_space<vmem>>, vector<96x128xbf16>
    %cst = arith.constant dense<0.000000e+00> : vector<8x128xf32>
    %3 = tpu.matmul %1, %2, %cst {dimension_numbers = #tpu.dot_dimension_numbers<[1], [0], [0], [1], [0, 0, 1, 1], [], []>} : vector<8x96xbf16>, vector<96x128xbf16>, vector<8x128xf32> -> vector<8x128xf32>
    %c0_3 = arith.constant 0 : index
    %c0_4 = arith.constant 0 : index
    %4 = vector.load %arg3[%c0_3, %c0_4] : memref<1x128xf32, #tpu.memory_space<vmem>>, vector<1x128xf32>
    %5 = vector.broadcast %4 : vector<1x128xf32> to vector<8x128xf32>
    %6 = arith.addf %3, %5 : vector<8x128xf32>
    %7 = tpu.iota {dimensions = array<i32: 1>} : vector<1x128xi32>
    %c64_i32 = arith.constant 64 : i32
    %8 = vector.broadcast %c64_i32 : i32 to vector<1x128xi32>
    %9 = arith.cmpi slt, %7, %8 : vector<1x128xi32>
    %cst_5 = arith.constant 0.000000e+00 : f32
    %10 = vector.broadcast %cst_5 : f32 to vector<8x128xf32>
    %11 = arith.maximumf %6, %10 : vector<8x128xf32>
    %12 = vector.shape_cast %9 : vector<1x128xi1> to vector<1x128xi1>
    %13 = vector.broadcast %12 : vector<1x128xi1> to vector<8x128xi1>
    %14 = arith.select %13, %11, %6 : vector<8x128xi1>, vector<8x128xf32>
    %15 = arith.truncf %14 : vector<8x128xf32> to vector<8x128xbf16>
    %c0_6 = arith.constant 0 : index
    %c0_7 = arith.constant 0 : index
    %16 = vector.load %arg4[%c0_6, %c0_7] : memref<128x128xbf16, #tpu.memory_space<vmem>>, vector<128x128xbf16>
    %cst_8 = arith.constant dense<0.000000e+00> : vector<8x128xf32>
    %17 = tpu.matmul %15, %16, %cst_8 {dimension_numbers = #tpu.dot_dimension_numbers<[1], [0], [0], [1], [0, 0, 1, 1], [], []>} : vector<8x128xbf16>, vector<128x128xbf16>, vector<8x128xf32> -> vector<8x128xf32>
    %c0_9 = arith.constant 0 : index
    %c0_10 = arith.constant 0 : index
    %18 = vector.load %arg5[%c0_9, %c0_10] : memref<1x128xf32, #tpu.memory_space<vmem>>, vector<1x128xf32>
    %19 = vector.broadcast %18 : vector<1x128xf32> to vector<8x128xf32>
    %20 = arith.addf %17, %19 : vector<8x128xf32>
    %cst_11 = arith.constant 0.000000e+00 : f32
    %21 = vector.broadcast %cst_11 : f32 to vector<8x128xf32>
    %22 = arith.maximumf %20, %21 : vector<8x128xf32>
    %23 = vector.shape_cast %9 : vector<1x128xi1> to vector<1x128xi1>
    %24 = vector.broadcast %23 : vector<1x128xi1> to vector<8x128xi1>
    %25 = arith.select %24, %22, %20 : vector<8x128xi1>, vector<8x128xf32>
    %26 = arith.truncf %25 : vector<8x128xf32> to vector<8x128xbf16>
    %c0_12 = arith.constant 0 : index
    %c0_13 = arith.constant 0 : index
    %27 = vector.load %arg6[%c0_12, %c0_13] : memref<128x8xbf16, #tpu.memory_space<vmem>>, vector<128x8xbf16>
    %cst_14 = arith.constant dense<0.000000e+00> : vector<8x8xf32>
    %28 = tpu.matmul %26, %27, %cst_14 {dimension_numbers = #tpu.dot_dimension_numbers<[1], [0], [0], [1], [0, 0, 1, 1], [], []>} : vector<8x128xbf16>, vector<128x8xbf16>, vector<8x8xf32> -> vector<8x8xf32>
    %c0_15 = arith.constant 0 : index
    %c0_16 = arith.constant 0 : index
    %29 = vector.load %arg7[%c0_15, %c0_16] : memref<1x8xf32, #tpu.memory_space<vmem>>, vector<1x8xf32>
    %30 = vector.broadcast %29 : vector<1x8xf32> to vector<8x8xf32>
    %31 = arith.addf %28, %30 : vector<8x8xf32>
    %32 = tpu.iota {dimensions = array<i32: 1>} : vector<1x8xi32>
    %c2_i32 = arith.constant 2 : i32
    %33 = vector.broadcast %c2_i32 : i32 to vector<1x8xi32>
    %34 = arith.cmpi slt, %32, %33 : vector<1x8xi32>
    %cst_17 = arith.constant -1.000000e+30 : f32
    %35 = vector.shape_cast %34 : vector<1x8xi1> to vector<1x8xi1>
    %36 = vector.broadcast %35 : vector<1x8xi1> to vector<8x8xi1>
    %37 = vector.broadcast %cst_17 : f32 to vector<8x8xf32>
    %38 = arith.select %36, %31, %37 : vector<8x8xi1>, vector<8x8xf32>
    %cst_18 = arith.constant dense<0xFF800000> : vector<8xf32>
    %39 = vector.multi_reduction <maximumf>, %38, %cst_18 [1] : vector<8x8xf32> to vector<8xf32>
    %40 = vector.shape_cast %39 : vector<8xf32> to vector<8x1xf32>
    %cst_19 = arith.constant -1.000000e+30 : f32
    %41 = vector.shape_cast %34 : vector<1x8xi1> to vector<1x8xi1>
    %42 = vector.broadcast %41 : vector<1x8xi1> to vector<8x8xi1>
    %43 = vector.broadcast %cst_19 : f32 to vector<8x8xf32>
    %44 = arith.select %42, %43, %31 : vector<8x8xi1>, vector<8x8xf32>
    %cst_20 = arith.constant dense<0xFF800000> : vector<8xf32>
    %45 = vector.multi_reduction <maximumf>, %44, %cst_20 [1] : vector<8x8xf32> to vector<8xf32>
    %46 = vector.shape_cast %45 : vector<8xf32> to vector<8x1xf32>
    %47 = vector.shape_cast %34 : vector<1x8xi1> to vector<1x8xi1>
    %48 = vector.broadcast %47 : vector<1x8xi1> to vector<8x8xi1>
    %49 = vector.shape_cast %40 : vector<8x1xf32> to vector<8x1xf32>
    %50 = vector.broadcast %49 : vector<8x1xf32> to vector<8x8xf32>
    %51 = vector.shape_cast %46 : vector<8x1xf32> to vector<8x1xf32>
    %52 = vector.broadcast %51 : vector<8x1xf32> to vector<8x8xf32>
    %53 = arith.select %48, %50, %52 : vector<8x8xi1>, vector<8x8xf32>
    %54 = arith.subf %31, %53 : vector<8x8xf32>
    %55 = math.exp %54 : vector<8x8xf32>
    %cst_21 = arith.constant 0.000000e+00 : f32
    %56 = vector.shape_cast %34 : vector<1x8xi1> to vector<1x8xi1>
    %57 = vector.broadcast %56 : vector<1x8xi1> to vector<8x8xi1>
    %58 = vector.broadcast %cst_21 : f32 to vector<8x8xf32>
    %59 = arith.select %57, %55, %58 : vector<8x8xi1>, vector<8x8xf32>
    %cst_22 = arith.constant dense<0.000000e+00> : vector<8xf32>
    %60 = vector.multi_reduction <add>, %59, %cst_22 [1] : vector<8x8xf32> to vector<8xf32>
    %61 = vector.shape_cast %60 : vector<8xf32> to vector<8x1xf32>
    %cst_23 = arith.constant 0.000000e+00 : f32
    %62 = vector.shape_cast %34 : vector<1x8xi1> to vector<1x8xi1>
    %63 = vector.broadcast %62 : vector<1x8xi1> to vector<8x8xi1>
    %64 = vector.broadcast %cst_23 : f32 to vector<8x8xf32>
    %65 = arith.select %63, %64, %55 : vector<8x8xi1>, vector<8x8xf32>
    %cst_24 = arith.constant dense<0.000000e+00> : vector<8xf32>
    %66 = vector.multi_reduction <add>, %65, %cst_24 [1] : vector<8x8xf32> to vector<8xf32>
    %67 = vector.shape_cast %66 : vector<8xf32> to vector<8x1xf32>
    %68 = vector.shape_cast %34 : vector<1x8xi1> to vector<1x8xi1>
    %69 = vector.broadcast %68 : vector<1x8xi1> to vector<8x8xi1>
    %70 = vector.shape_cast %61 : vector<8x1xf32> to vector<8x1xf32>
    %71 = vector.broadcast %70 : vector<8x1xf32> to vector<8x8xf32>
    %72 = vector.shape_cast %67 : vector<8x1xf32> to vector<8x1xf32>
    %73 = vector.broadcast %72 : vector<8x1xf32> to vector<8x8xf32>
    %74 = arith.select %69, %71, %73 : vector<8x8xi1>, vector<8x8xf32>
    %75 = tpu.reciprocal %74 {approx = true} : vector<8x8xf32> -> vector<8x8xf32>
    %76 = arith.mulf %55, %75 : vector<8x8xf32>
    %c0_25 = arith.constant 0 : index
    %c0_26 = arith.constant 0 : index
    %77 = vector.load %arg8[%c0_25, %c0_26] : memref<8x8xf32, #tpu.memory_space<vmem>>, vector<8x8xf32>
    tpu.vector_store %arg8[%c0_25, %c0_26], %76 {strides = array<i32>} : memref<8x8xf32, #tpu.memory_space<vmem>>, vector<8x8xf32>,
    return
  }
  func.func @transform_0(%arg0: i32) -> (i32, i32) {
    %c0_i32 = arith.constant 0 : i32
    %c0_i32_0 = arith.constant 0 : i32
    return %arg0, %c0_i32 : i32, i32
  }
  func.func @transform_1(%arg0: i32) -> (i32, i32) {
    %c0_i32 = arith.constant 0 : i32
    %c0_i32_0 = arith.constant 0 : i32
    %c0_i32_1 = arith.constant 0 : i32
    return %c0_i32, %c0_i32_0 : i32, i32
  }
  func.func @transform_2(%arg0: i32) -> (i32, i32) {
    %c0_i32 = arith.constant 0 : i32
    %c0_i32_0 = arith.constant 0 : i32
    %c0_i32_1 = arith.constant 0 : i32
    return %c0_i32, %c0_i32_0 : i32, i32
  }
  func.func @transform_3(%arg0: i32) -> (i32, i32) {
    %c0_i32 = arith.constant 0 : i32
    %c0_i32_0 = arith.constant 0 : i32
    %c0_i32_1 = arith.constant 0 : i32
    return %c0_i32, %c0_i32_0 : i32, i32
  }
  func.func @transform_4(%arg0: i32) -> (i32, i32) {
    %c0_i32 = arith.constant 0 : i32
    %c0_i32_0 = arith.constant 0 : i32
    %c0_i32_1 = arith.constant 0 : i32
    return %c0_i32, %c0_i32_0 : i32, i32
  }
  func.func @transform_5(%arg0: i32) -> (i32, i32) {
    %c0_i32 = arith.constant 0 : i32
    %c0_i32_0 = arith.constant 0 : i32
    %c0_i32_1 = arith.constant 0 : i32
    return %c0_i32, %c0_i32_0 : i32, i32
  }
  func.func @transform_6(%arg0: i32) -> (i32, i32) {
    %c0_i32 = arith.constant 0 : i32
    %c0_i32_0 = arith.constant 0 : i32
    %c0_i32_1 = arith.constant 0 : i32
    return %c0_i32, %c0_i32_0 : i32, i32
  }
  func.func @transform_7(%arg0: i32) -> (i32, i32) {
    %c0_i32 = arith.constant 0 : i32
    %c0_i32_0 = arith.constant 0 : i32
    return %arg0, %c0_i32 : i32, i32
  }
}

</mosaic_0001>

<bundles_post_ra>
// kernel: nnq_forward.1
= control target key start
LH: loop header
LB: loop body
LE: loop exit
PB: predicated region body
PF: predicated region fallthrough
CT: control target
= control target key end

     0   :  { %v528_v0 = vmov 0.0   ;;  %vm529_vm0 = vmmov 0   ;;  %vm84_vm1 = vcmask 785408   ;;  %v128_v23 = vlaneseq  ;;  %s692_s1 = inlined_call_operand.vmem [shape: bf16[96,128], index: 1, kind: input, shape index: {}]   ;;  %s693_s3 = inlined_call_operand.vmem [shape: bf16[128,128], index: 3, kind: input, shape index: {}]   ;;  %s694_s0 = inlined_call_operand.vmem [shape: f32[8,96], index: 0, kind: input, shape index: {}]   ;;  %s695_s5 = inlined_call_operand.vmem [shape: bf16[128,8], index: 5, kind: input, shape index: {}]   ;;  %s696_s2 = inlined_call_operand.vmem [shape: f32[1,128], index: 2, kind: input, shape index: {}]   ;;  %s697_s4 = inlined_call_operand.vmem [shape: f32[1,128], index: 4, kind: input, shape index: {}]   ;;  %s698_s6 = inlined_call_operand.vmem [shape: f32[1,8], index: 6, kind: input, shape index: {}]   ;;  %s699_s7 = inlined_call_operand.vmem [shape: f32[8,8], index: 7, kind: output, shape index: {}]  }
   0x1   :  { %444 = vmatprep.subr.bf16.mxu0 %v528_v0  ;;  %v502_v1 = vld [vmem:[%s692_s1] sm:$0xff]   ;;  %456 = vmatprep.mubr.msk.bf16.mxu0 %vm529_vm0, %v528_v0  ;;  %v503_v2 = vld [vmem:[%s692_s1 + $0x8] sm:$0xff]   ;;  %v504_v3 = vld [vmem:[%s692_s1 + $0x10] sm:$0xff]   ;;  %vm365_vm4 = vcmask 64512  }
   0x2   :  { %460 = vmatprep.subr.bf16.mxu1 %v528_v0  ;;  %476 = vmatprep.mubr.msk.bf16.mxu1 %vm529_vm0, %v528_v0  ;;  %v508_v4 = vld [vmem:[%s693_s3] sm:$0xff]   ;;  %v509_v5 = vld [vmem:[%s693_s3 + $0x8] sm:$0xff]   ;;  %v505_v6 = vld [vmem:[%s692_s1 + $0x18] sm:$0xff]   ;;  %v129_v25 = vand.u32 127, %v128_v23 }
   0x3   :  { %445 = vmatpush3.bf16.msra.mxu0 %v502_v1  ;;  %461 = vmatpush3.bf16.msra.mxu1 %v508_v4  ;;  %v510_v7 = vld [vmem:[%s693_s3 + $0x10] sm:$0xff]   ;;  %v506_v8 = vld [vmem:[%s692_s1 + $0x20] sm:$0xff]   ;;  %v511_v9 = vld [vmem:[%s693_s3 + $0x18] sm:$0xff]  }
   0x4   :  { %446 = vmatprep.subr.bf16.mxu0 %v528_v0  ;;  %462 = vmatprep.subr.bf16.mxu1 %v528_v0  ;;  %v507_v10 = vld [vmem:[%s692_s1 + $0x28] sm:$0xff]   ;;  %v27_v11 = vld [vmem:[%s694_s0] sm:$0xff]  ;;  %v514_v15 = vld [vmem:[%s693_s3 + $0x30] sm:$0xff]   ;;  %vm130_vm2 = vcmp.lt.s32.totalorder %v129_v25, 64  ;;  %vm361_vm3 = vcmp.lt.s32.totalorder %v129_v25, 2 }
   0x5   :  { %v28_v12 = vpack.c.bf16 %v27_v11, %v27_v11  ;;  %v512_v13 = vld [vmem:[%s693_s3 + $0x20] sm:$0xff]   ;;  %v513_v14 = vld [vmem:[%s693_s3 + $0x28] sm:$0xff]   ;;  %v515_v16 = vld [vmem:[%s693_s3 + $0x38] sm:$0xff]  }
   0x6   :  { %v516_v17 = vld [vmem:[%s695_s5] sm:$0xff]   ;;  %v517_v18 = vld [vmem:[%s695_s5 + $0x8] sm:$0xff]   ;;  %v518_v19 = vld [vmem:[%s695_s5 + $0x10] sm:$0xff]  }
   0x7   :  { %447 = vmatpush3.bf16.msra.mxu0 %v503_v2  ;;  %463 = vmatpush3.bf16.msra.mxu1 %v509_v5  ;;  %v519_v20 = vld [vmem:[%s695_s5 + $0x18] sm:$0xff]   ;;  %v520_v21 = vld [vmem:[%s695_s5 + $0x20] sm:$0xff]   ;;  %v521_v22 = vld [vmem:[%s695_s5 + $0x28] sm:$0xff]  }
   0x8   :  { %448 = vmatprep.subr.bf16.mxu0 %v528_v0  ;;  %464 = vmatprep.subr.bf16.mxu1 %v528_v0  ;;  %v393_v24 = vld [vmem:[%s696_s2] ss:$0 sm:$0xff]  ;;  %v522_v34 = vld [vmem:[%s695_s5 + $0x30] sm:$0xff]   ;;  %v523_v35 = vld [vmem:[%s695_s5 + $0x38] sm:$0xff]  }
   0x9   :  { %v401_v36 = vld [vmem:[%s697_s4] ss:$0 sm:$0xff] }
   0xa   :  { %v410_v45 = vld [vmem:[%s698_s6] ss:$0 sm:$0xff] }
   0xb   :  { %449 = vmatpush3.bf16.msra.mxu0 %v504_v3  ;;  %465 = vmatpush3.bf16.msra.mxu1 %v510_v7 }
   0xc   :  { %450 = vmatprep.subr.bf16.mxu0 %v528_v0  ;;  %466 = vmatprep.subr.bf16.mxu1 %v528_v0 }
   0xf   :  { %451 = vmatpush3.bf16.msra.mxu0 %v505_v6  ;;  %467 = vmatpush3.bf16.msra.mxu1 %v511_v9 }
  0x10   :  { %452 = vmatprep.subr.bf16.mxu0 %v528_v0  ;;  %468 = vmatprep.subr.bf16.mxu1 %v528_v0 }
  0x13   :  { %453 = vmatpush3.bf16.msra.mxu0 %v506_v8  ;;  %469 = vmatpush3.bf16.msra.mxu1 %v512_v13 }
  0x14   :  { %454 = vmatprep.subr.bf16.mxu0 %v528_v0  ;;  %470 = vmatprep.subr.bf16.mxu1 %v528_v0 }
  0x17   :  { %455 = vmatpush3.bf16.msra.mxu0 %v507_v10  ;;  %471 = vmatpush3.bf16.msra.mxu1 %v513_v14 }
  0x18   :  { %480 = vmatprep.subr.bf16.mxu0 %v528_v0  ;;  %472 = vmatprep.subr.bf16.mxu1 %v528_v0 }
  0x1a   :  { %457 = vmatmul.mubr.msk.bf16.vlgmr.msra.gmra.mrb[0].mxu0 %vm84_vm1, %v28_v12 }
  0x1b   :  { %496 = vmatprep.mubr.msk.bf16.mxu0 %vm529_vm0, %v528_v0  ;;  %473 = vmatpush3.bf16.msra.mxu1 %v514_v15 }
  0x1c   :  { %474 = vmatprep.subr.bf16.mxu1 %v528_v0  ;;  %481 = vmatpush3.bf16.msra.mxu0 %v516_v17 }
  0x1d   :  { %482 = vmatprep.subr.bf16.mxu0 %v528_v0 }
  0x1f   :  { %475 = vmatpush3.bf16.msra.mxu1 %v515_v16 }
  0x20   :  { %483 = vmatpush3.bf16.msra.mxu0 %v517_v18 }
  0x21   :  { %484 = vmatprep.subr.bf16.mxu0 %v528_v0 }
  0x24   :  { %485 = vmatpush3.bf16.msra.mxu0 %v518_v19 }
  0x25   :  { %486 = vmatprep.subr.bf16.mxu0 %v528_v0 }
  0x28   :  { %487 = vmatpush3.bf16.msra.mxu0 %v519_v20 }
  0x29   :  { %488 = vmatprep.subr.bf16.mxu0 %v528_v0 }
  0x2c   :  { %489 = vmatpush3.bf16.msra.mxu0 %v520_v21 }
  0x2d   :  { %490 = vmatprep.subr.bf16.mxu0 %v528_v0 }
  0x30   :  { %491 = vmatpush3.bf16.msra.mxu0 %v521_v22 }
  0x31   :  { %492 = vmatprep.subr.bf16.mxu0 %v528_v0 }
  0x34   :  { %493 = vmatpush3.bf16.msra.mxu0 %v522_v34 }
  0x35   :  { %494 = vmatprep.subr.bf16.mxu0 %v528_v0 }
  0x38   :  { %495 = vmatpush3.bf16.msra.mxu0 %v523_v35 }
  0xed   :  { %v122_v26 = vpop.f32.mrb[0].mxu0 }
  0xee   :  { %v123_v27 = vadd.f32 %v393_v24, %v122_v26  ;;  %v458_v28 = vpop.f32.mrb[1].mxu0 }
  0xef   :  { %v125_v29 = vpop.f32.mrb[2].mxu0 }
  0xf0   :  { %v131_v30 = vmax.f32 %v123_v27, 0.0  ;;  %v459_v31 = vpop.f32.mrb[3].mxu0 }
  0xf2   :  { %v134_v32 = vsel %vm130_vm2, %v131_v30, %v123_v27 }
  0xf3   :  { %v135_v33 = vpack.c.bf16 %v134_v32, %v134_v32 }
  0xf5   :  { %477 = vmatmul.mubr.bf16.vlgmr.msra.gmra.mrb[0].mxu1 %v135_v33 }
 0x1c8   :  { %v241_v37 = vpop.f32.mrb[0].mxu1 }
 0x1c9   :  { %v242_v38 = vadd.f32 %v401_v36, %v241_v37  ;;  %v478_v39 = vpop.f32.mrb[1].mxu1 }
 0x1ca   :  { %v244_v40 = vpop.f32.mrb[2].mxu1 }
 0x1cb   :  { %v247_v41 = vmax.f32 %v242_v38, 0.0  ;;  %v479_v42 = vpop.f32.mrb[3].mxu1 }
 0x1cd   :  { %v248_v43 = vsel %vm130_vm2, %v247_v41, %v242_v38 }
 0x1ce   :  { %v249_v44 = vpack.c.bf16 %v248_v43, %v248_v43 }
 0x1d0   :  { %497 = vmatmul.mubr.bf16.vlgmr.msra.gmra.mrb[4].mxu0 %v249_v44 }
 0x2a3   :  { %v355_v46 = vpop.f32.mrb[4].mxu0 }
 0x2a4   :  { %v356_v47 = vadd.f32 %v410_v45, %v355_v46  ;;  %v498_v48 = vpop.f32.mrb[5].mxu0 }
 0x2a5   :  { %v358_v49 = vpop.f32.mrb[6].mxu0 }
 0x2a6   :  { %v499_v50 = vpop.f32.mrb[7].mxu0  ;;  %v364_v51 = vsel %vm361_vm3, %v356_v47, -1e+30  ;;  %v369_v53 = vsel %vm361_vm3, -1e+30, %v356_v47 }
 0x2a7   :  { %v366_v52 = vsel %vm365_vm4, %v364_v51, -inf  ;;  %v370_v54 = vsel %vm365_vm4, %v369_v53, -inf }
 0x2a8   :  { %367 = vmax.xlane.f32.xlu0 %v366_v52 }
 0x2ac   :  { %371 = vmax.xlane.f32.xlu0 %v370_v54 }
 0x335   :  { %v368_v55 = vpop.xlane.xlu0 %367 }
 0x339   :  { %v372_v56 = vpop.xlane.xlu0 %371 }
 0x33a   :  { %v373_v57 = vsel %vm361_vm3, %v368_v55, %v372_v56 }
 0x33b   :  { %v374_v58 = vsub.f32 %v356_v47, %v373_v57 }
 0x33d   :  { %v375_v59 = vmul.f32 1.442695, %v374_v58 }
 0x33f   :  { %524 = vpow2.f32 %v375_v59 }
 0x349   :  { %v525_v60 = vpop.eup %524 }
 0x34a   :  { %v377_v61 = vsel %vm361_vm3, %v525_v60, 0.0  ;;  %v381_v63 = vsel %vm361_vm3, 0.0, %v525_v60 }
 0x34b   :  { %v378_v62 = vsel %vm365_vm4, %v377_v61, 0.0  ;;  %v382_v0 = vsel %vm365_vm4, %v381_v63, 0.0 }
 0x34c   :  { %379 = vadd.xlane.f32.xlu1 %v378_v62 }
 0x350   :  { %383 = vadd.xlane.f32.xlu1 %v382_v0 }
 0x3d9   :  { %v380_v1 = vpop.xlane.xlu1 %379 }
 0x3dd   :  { %v384_v2 = vpop.xlane.xlu1 %383 }
 0x3de   :  { %v385_v3 = vsel %vm361_vm3, %v380_v1, %v384_v2 }
 0x3df   :  { %526 = vrcp.f32 %v385_v3 }
 0x3e9   :  { %v527_v4 = vpop.eup %526 }
 0x3ea   :  { %v387_v5 = vmul.f32 %v527_v4, %v525_v60 }
 0x3ec   :  { %388 = vst.msk [vmem:[%s699_s7] sm:$0xff] %vm365_vm4, %v387_v5 }

</bundles_post_ra>
